<compile_context>
chip_gen: v6e
topology: v6e:2x2x1
jax: 0.10.0
libtpu: 0.0.40
codegen_flags: <defaults>
</compile_context>

<pallas_src>
import math

import jax
import jax.numpy as jnp
from jax.experimental import pallas as pl
from jax.experimental.pallas import tpu as pltpu


def _hp_kernel_fused(x_ref, bias_ref, out_ref):
    """x_ref: (TR, 2*dim) slab holding [x1 | x2] on the lane axis."""
    d = out_ref.shape[-1]
    x = x_ref[...]
    x1 = x[:, :d].astype(jnp.float32)
    x2 = x[:, d:].astype(jnp.float32)
    b = bias_ref[...].astype(jnp.float32)            # (1, dim) broadcasts over rows
    gate = jax.nn.sigmoid(x1 + b)                    # exp + reciprocal on the EUP
    out_ref[...] = ((x1 * x1 - x2 * x2) * gate).astype(out_ref.dtype)


def _hp_kernel_split(x1_ref, x2_ref, bias_ref, out_ref):
    """x1_ref/x2_ref: (TR, dim) lane-aligned halves (dim % 128 == 0 path)."""
    x1 = x1_ref[...].astype(jnp.float32)
    x2 = x2_ref[...].astype(jnp.float32)
    b = bias_ref[...].astype(jnp.float32)
    gate = jax.nn.sigmoid(x1 + b)
    out_ref[...] = ((x1 * x1 - x2 * x2) * gate).astype(out_ref.dtype)


def _round_up(n, m):
    return ((n + m - 1) // m) * m


def hyperbolic_paraboloid_activation(x, bias, *, target_block_elems=256 * 1024):
    """x: (..., 2*dim), bias: (dim,) -> (..., dim).

    target_block_elems ~ TR*dim elements per output block.  Default (256K
    f32 elems) keeps the double-buffered per-step VMEM at ~6 MiB
    (x + out, x2 buffers = 24*TR*dim bytes), comfortable on v5e/v6e/v7x.
    """
    *lead, two_dim = x.shape
    dim = two_dim // 2
    assert two_dim == 2 * dim, "last dim of x must be even (2*dim)"
    assert bias.shape == (dim,)

    rows = math.prod(lead) if lead else 1
    x2d = x.reshape(rows, two_dim)
    bias2d = bias.reshape(1, dim)

    # Row tile: multiple of 8, capped by the (rounded-up) row count.
    tr = max(8, (target_block_elems // max(dim, 1)) // 8 * 8)
    tr = min(tr, _round_up(rows, 8))
    grid = (pl.cdiv(rows, tr),)

    out_spec = pl.BlockSpec((tr, dim), lambda i: (i, 0))
    bias_spec = pl.BlockSpec((1, dim), lambda i: (0, 0))   # constant -> stays resident

    compiler_params = pltpu.CompilerParams(dimension_semantics=("parallel",))

    if dim % 128 == 0:
        # Lane-aligned path: x passed twice, column-block 0 selects x1,
        # column-block 1 selects x2 (block indices, not element offsets).
        out2d = pl.pallas_call(
            _hp_kernel_split,
            out_shape=jax.ShapeDtypeStruct((rows, dim), x.dtype),
            grid=grid,
            in_specs=[
                pl.BlockSpec((tr, dim), lambda i: (i, 0)),   # x1 half
                pl.BlockSpec((tr, dim), lambda i: (i, 1)),   # x2 half
                bias_spec,
            ],
            out_specs=out_spec,
            compiler_params=compiler_params,
        )(x2d, x2d, bias2d)
    else:
        # Small-dim path: full-width column block (satisfies (8,128) rule),
        # split into halves inside the kernel.
        out2d = pl.pallas_call(
            _hp_kernel_fused,
            out_shape=jax.ShapeDtypeStruct((rows, dim), x.dtype),
            grid=grid,
            in_specs=[
                pl.BlockSpec((tr, two_dim), lambda i: (i, 0)),
                bias_spec,
            ],
            out_specs=out_spec,
            compiler_params=compiler_params,
        )(x2d, bias2d)

    return out2d.reshape(*lead, dim)


if __name__ == "__main__":
    key = jax.random.PRNGKey(0)

    def _ref(x, bias):
        d = bias.shape[0]
        x1, x2 = x[..., :d], x[..., d:]
        return (x1 ** 2 - x2 ** 2) * jax.nn.sigmoid(x1 + bias)

    checks = []

    # 1) Module-implied small shape: dim=32 (fused-slab path), rows=16, one tile.
    dim = 32
    kx, kb, key = jax.random.split(key, 3)
    x = jax.random.normal(kx, (2, 8, 2 * dim), dtype=jnp.float32)
    bias = jax.random.normal(kb, (dim,), dtype=jnp.float32)
    out = jax.block_until_ready(hyperbolic_paraboloid_activation(x, bias))
    checks.append(
        out.shape == (2, 8, dim)
        and bool(jnp.allclose(out, _ref(x, bias), atol=1e-5, rtol=1e-5))
    )

    # 2) dim=32, ragged row count (21 rows) with a tiny row tile to exercise
    #    multi-step pipelining + edge padding on the fused path.
    kx, kb, key = jax.random.split(key, 3)
    x = jax.random.normal(kx, (3, 7, 2 * dim), dtype=jnp.float32)
    bias = jax.random.normal(kb, (dim,), dtype=jnp.float32)
    out = jax.block_until_ready(
        hyperbolic_paraboloid_activation(x, bias, target_block_elems=256)
    )
    checks.append(bool(jnp.allclose(out, _ref(x, bias), atol=1e-5, rtol=1e-5)))

    # 3) dim=128 (lane-aligned split-spec path), ragged grid (65 rows / TR=16).
    dim = 128
    kx, kb, key = jax.random.split(key, 3)
    x = jax.random.normal(kx, (5, 13, 2 * dim), dtype=jnp.float32)
    bias = jax.random.normal(kb, (dim,), dtype=jnp.float32)
    out = jax.block_until_ready(
        hyperbolic_paraboloid_activation(x, bias, target_block_elems=2048)
    )
    checks.append(
        out.shape == (5, 13, dim)
        and bool(jnp.allclose(out, _ref(x, bias), atol=1e-5, rtol=1e-5))
    )

    assert all(checks), f"checks failed: {checks}"
    print("KERNEL_OK")
</pallas_src>

<mosaic_0001>
module attributes {stable_mosaic.version = 11 : i64} {
  func.func @_hp_kernel_fused(%arg0: i32, %arg1: memref<16x64xf32, #tpu.memory_space<vmem>>, %arg2: memref<1x32xf32, #tpu.memory_space<vmem>>, %arg3: memref<16x32xf32, #tpu.memory_space<vmem>>) attributes {dimension_semantics = [#tpu.dimension_semantics<parallel>], iteration_bounds = array<i64: 1>, scalar_prefetch = 0 : i64, scratch_operands = 0 : i64, tpu.core_type = #tpu.core_type<tc>, window_params = [{transform_indices = @transform_0, window_bounds = array<i64: 16, 64>}, {pipeline_mode = #tpu.pipeline_mode<synchronous>, transform_indices = @transform_1, window_bounds = array<i64: 1, 32>}, {transform_indices = @transform_2, window_bounds = array<i64: 16, 32>}]} {
    %c0 = arith.constant 0 : index
    %c0_0 = arith.constant 0 : index
    %0 = vector.load %arg1[%c0, %c0_0] : memref<16x64xf32, #tpu.memory_space<vmem>>, vector<16x64xf32>
    %1 = vector.extract_strided_slice %0 {offsets = [0, 0], sizes = [16, 32], strides = [1, 1]} : vector<16x64xf32> to vector<16x32xf32>
    %2 = vector.extract_strided_slice %0 {offsets = [0, 32], sizes = [16, 32], strides = [1, 1]} : vector<16x64xf32> to vector<16x32xf32>
    %c0_1 = arith.constant 0 : index
    %c0_2 = arith.constant 0 : index
    %3 = vector.load %arg2[%c0_1, %c0_2] : memref<1x32xf32, #tpu.memory_space<vmem>>, vector<1x32xf32>
    %4 = vector.broadcast %3 : vector<1x32xf32> to vector<16x32xf32>
    %5 = arith.addf %1, %4 : vector<16x32xf32>
    %6 = arith.negf %5 : vector<16x32xf32>
    %7 = math.exp %6 : vector<16x32xf32>
    %cst = arith.constant 1.000000e+00 : f32
    %8 = vector.broadcast %cst : f32 to vector<16x32xf32>
    %9 = arith.addf %8, %7 : vector<16x32xf32>
    %10 = arith.divf %8, %9 : vector<16x32xf32>
    %11 = arith.mulf %1, %1 : vector<16x32xf32>
    %12 = arith.mulf %2, %2 : vector<16x32xf32>
    %13 = arith.subf %11, %12 : vector<16x32xf32>
    %14 = arith.mulf %13, %10 : vector<16x32xf32>
    %c0_3 = arith.constant 0 : index
    %c0_4 = arith.constant 0 : index
    %15 = vector.load %arg3[%c0_3, %c0_4] : memref<16x32xf32, #tpu.memory_space<vmem>>, vector<16x32xf32>
    tpu.vector_store %arg3[%c0_3, %c0_4], %14 {strides = array<i32>} : memref<16x32xf32, #tpu.memory_space<vmem>>, vector<16x32xf32>,
    return
  }
  func.func @transform_0(%arg0: i32) -> (i32, i32) {
    %c0_i32 = arith.constant 0 : i32
    %c0_i32_0 = arith.constant 0 : i32
    return %arg0, %c0_i32 : i32, i32
  }
  func.func @transform_1(%arg0: i32) -> (i32, i32) {
    %c0_i32 = arith.constant 0 : i32
    %c0_i32_0 = arith.constant 0 : i32
    %c0_i32_1 = arith.constant 0 : i32
    return %c0_i32, %c0_i32_0 : i32, i32
  }
  func.func @transform_2(%arg0: i32) -> (i32, i32) {
    %c0_i32 = arith.constant 0 : i32
    %c0_i32_0 = arith.constant 0 : i32
    return %arg0, %c0_i32 : i32, i32
  }
}

</mosaic_0001>

<bundles_post_ra>
// kernel: tpu_custom_call.1
= control target key start
LH: loop header
LB: loop body
LE: loop exit
PB: predicated region body
PF: predicated region fallthrough
CT: control target
= control target key end

     0   :  { %7 = vsyncpa [#allocation3], 0  ;;  %s178_s0 = inlined_call_operand.hbm [shape: f32[16,64], index: 0, kind: input, shape index: {}]   ;;  %s179_s1 = inlined_call_operand.vmem [shape: f32[1,32], index: 1, kind: input, shape index: {}]   ;;  %s180_s2 = inlined_call_operand.hbm [shape: f32[16,32], index: 2, kind: output, shape index: {}]  }
   0x1   :  { %8 = vsyncpa [#allocation4], 0  ;;  %s143_s9 = smov [#allocation2]  }
   0x2   :  { %s14_s10 = sshll.u32 %s143_s9, 4  ;;  %s15_s10 = int_to_ptr.vmem [resolvable:$true] %s14_s10 }
   0x3   :  { %s107_s11 = scalar_lea.vmem %s15_s10, 256  ;;  %p112_p1 = scmp.lt.s32.totalorder %s15_s10, %s15_s10 }
   0x4   :  { %p108_p0 = scmp.ne.s32.totalorder %s15_s10, %s107_s11  ;;  %p113_p2 = scmp.lt.s32.totalorder %s107_s11, %s107_s11 }
   0x6   :  { %p114_p3 = por %p113_p2, %p112_p1 }
   0x8   :  { %p115_p4 = pnand %p114_p3, %p108_p0 }
   0xa   :  { %118 = shalt.err (!%p115_p4)
}
   0xb   :  { %s144_s12 = smov 128   ;;  %s145_s13 = smov 8  }
   0xc   :  { %20 = dma.hbm_to_vmem [thread:$0]  %s178_s0, 256, %s15_s10, [#allocation3], %s144_s12, %s144_s12, %s145_s13  }
   0xd   :  { %139 = dma.done.wait [#allocation3], 256  }
   0xe   :  { %140 = vsyncadd [#allocation3], 4294967040  ;;  %v26_v0 = vld [vmem:[#allocation2] sm:$0xff]  ;;  %v27_v1 = vld [vmem:[#allocation2 + $0x8] sm:$0xff]  ;;  %s146_s16 = smov 96   ;;  %vm63_vm0 = vcmask 261120  }
   0xf   :  { %v49_v2 = vmul.f32 %v26_v0, %v26_v0  ;;  %v50_v3 = vmul.f32 %v27_v1, %v27_v1  ;;  %v83_v4 = vld [vmem:[%s179_s1] ss:$0 sm:$0xff]  ;;  %s147_s0 = smov [#allocation5]  }
  0x10   :  { %v35_v5 = vadd.f32 %v83_v4, %v26_v0  ;;  %v36_v7 = vadd.f32 %v83_v4, %v27_v1  ;;  %s71_s1 = sshll.u32 %s147_s0, 4  ;;  %s72_s1 = int_to_ptr.vmem [resolvable:$true] %s71_s1 }
  0x11   :  { %53 = vrot.lane.b32.xlu0 %v49_v2, %s146_s16  ;;  %s119_s19 = scalar_lea.vmem %s72_s1, 256  ;;  %p124_p6 = scmp.lt.s32.totalorder %s72_s1, %s72_s1 }
  0x12   :  { %v84_v6 = vmul.f32 -1.442695, %v35_v5  ;;  %v85_v8 = vmul.f32 -1.442695, %v36_v7  ;;  %p120_p5 = scmp.ne.s32.totalorder %s72_s1, %s119_s19  ;;  %p125_p7 = scmp.lt.s32.totalorder %s119_s19, %s119_s19 }
  0x14   :  { %91 = vpow2.f32 %v84_v6  ;;  %p126_p8 = por %p125_p7, %p124_p6 }
  0x15   :  { %55 = vrot.lane.b32.xlu0 %v50_v3, %s146_s16  ;;  %93 = vpow2.f32 %v85_v8 }
  0x16   :  { %p127_p9 = pnand %p126_p8, %p120_p5 }
  0x21   :  { %v92_v9 = vpop.eup %91 }
  0x22   :  { %v43_v10 = vadd.f32 1.0, %v92_v9  ;;  %v94_v11 = vpop.eup %93 }
  0x23   :  { %v44_v12 = vadd.f32 1.0, %v94_v11 }
  0x24   :  { %95 = vrcp.f32 %v43_v10 }
  0x25   :  { %97 = vrcp.f32 %v44_v12 }
  0x31   :  { %v96_v13 = vpop.eup %95 }
  0x32   :  { %v98_v17 = vpop.eup %97 }
  0x83   :  { %v54_v14 = vpop.permute.xlu0 %53 }
  0x84   :  { %v59_v15 = vsub.f32 %v49_v2, %v54_v14 }
  0x86   :  { %v61_v16 = vmul.f32 %v96_v13, %v59_v15 }
  0x87   :  { %v56_v18 = vpop.permute.xlu0 %55 }
  0x88   :  { %v60_v19 = vsub.f32 %v50_v3, %v56_v18  ;;  %64 = vst.msk [vmem:[#allocation5] sm:$0xff] %vm63_vm0, %v61_v16 }
  0x8a   :  { %v62_v20 = vmul.f32 %v98_v17, %v60_v19 }
  0x8c   :  { %65 = vst.msk [vmem:[#allocation5 + $0x8] sm:$0xff] %vm63_vm0, %v62_v20 }
  0x8d   :  { %130 = shalt.err (!%p127_p9)
}
  0x8e   :  { %77 = dma.vmem_to_hbm [thread:$0]  %s72_s1, 256, %s180_s2, [#allocation4], %s144_s12, %s144_s12, %s145_s13  }
  0x8f   :  { %141 = dma.done.wait [#allocation4], 256  }
  0x90   :  { %142 = vsyncadd [#allocation4], 4294967040 }
  0x91   :  { %81 = vsyncpa [#allocation3], 1 }
  0x92   :  { %82 = vsyncpa [#allocation4], 1 }

</bundles_post_ra>
